<compile_context>
chip_gen: v6e
topology: v6e:2x2x1
jax: 0.10.0
libtpu: 0.0.40
codegen_flags: <defaults>
</compile_context>

<pallas_src>
import jax
import jax.numpy as jnp
from jax.experimental import pallas as pl
from jax.experimental.pallas import tpu as pltpu


def _transproj_kernel(x_ref, t_ref, o_ref):
    # x_ref: (TB, L) input tile; t_ref: (1, L) resident transl row (same dtype);
    # o_ref: (TB, L).  (1, L) broadcasts over sublanes; add runs in input dtype.
    o_ref[...] = x_ref[...] + t_ref[...]


def _vmem_budgets():
    """(per-input-tile byte budget, scoped-VMEM limit) sized per TPU generation."""
    cap = 128 << 20  # fallback: v5e/v6e physical VMEM
    try:
        info = pltpu.get_tpu_info()
        cap = int(getattr(info, "vmem_capacity_bytes", cap))
    except Exception:
        pass
    # ~8 MiB input tiles on 128 MiB-VMEM parts (v5e/v6e), ~4 MiB on v7x (64 MiB).
    tile_budget = int(max(2 << 20, min(cap // 16, 8 << 20)))
    # Double-buffered in + out is ~4x tile_budget; leave generous headroom but
    # stay well under physical VMEM on every generation.
    vmem_limit = int(min(cap // 2, 64 << 20))
    return tile_budget, vmem_limit


def _choose_rows(nrows, row_bytes, sublane, tile_budget):
    """Rows per grid step: byte-targeted, rounded to the dtype's sublane tile."""
    if nrows <= sublane:
        return nrows                              # single full block along rows
    target = max(sublane, tile_budget // max(1, row_bytes))
    tb = min(target, nrows)
    return max(sublane, (tb // sublane) * sublane)


def transproj_pallas(x, transl, proj=None):
    """x: (B, F) f32/bf16; transl: (F,); proj is dropped by the [:, :-1] slice."""
    del proj  # mathematically eliminated by the reference forward's final slice
    B, F = x.shape
    dtype = x.dtype
    itemsize = jnp.dtype(dtype).itemsize
    sublane = max(8, 32 // itemsize)              # 8 f32, 16 bf16, 32 int8/fp8
    tile_budget, vmem_limit = _vmem_budgets()

    # Lane-dense repacking: with F < 128 every store would be a masked vst.msk.
    # When 128 % F == 0 and B is a multiple of the pack factor, view the
    # row-major (B, F) buffer as (B*F/128, 128) and tile transl across the
    # packed lane row; the broadcast add is unchanged element-for-element.
    pack = (128 // F) if (F < 128 and 128 % F == 0) else 1
    if pack > 1 and B % pack == 0:
        L = 128
        rows = (B * F) // L
        x2 = x.reshape(rows, L)                   # free: contiguous row-major view
        t2 = jnp.tile(transl.astype(dtype), pack).reshape(1, L)
    else:
        L = F                                     # fallback: full-F blocks
        rows = B
        x2 = x
        t2 = transl.astype(dtype).reshape(1, F)

    tb = _choose_rows(rows, L * itemsize, sublane, tile_budget)
    grid = (pl.cdiv(rows, tb),)                   # ragged tail handled by masking

    out2 = pl.pallas_call(
        _transproj_kernel,
        out_shape=jax.ShapeDtypeStruct((rows, L), dtype),
        grid=grid,
        in_specs=[
            pl.BlockSpec((tb, L), lambda i: (i, 0)),   # streamed input tiles
            pl.BlockSpec((1, L), lambda i: (0, 0)),    # transl row, VMEM-resident
        ],
        out_specs=pl.BlockSpec((tb, L), lambda i: (i, 0)),
        compiler_params=pltpu.CompilerParams(
            dimension_semantics=("parallel",),    # shards rows across v7x's 2 TCs
            vmem_limit_bytes=vmem_limit,
        ),
    )(x2, t2)

    return out2.reshape(B, F)


def transproj_ref(x, transl, proj):
    """Literal JAX transcription of the PyTorch forward (cat + eye matmul + slice)."""
    B, F = x.shape
    x_aug = jnp.concatenate(
        [x.astype(jnp.float32), jnp.ones((B, 1), jnp.float32)], axis=-1
    )
    w = jnp.eye(F + 1, dtype=jnp.float32)
    w = w.at[:-1, -1].set(transl.astype(jnp.float32))
    w = w.at[-1, :-1].set(proj.astype(jnp.float32))
    y = x_aug @ w.T
    return y[:, :-1].astype(x.dtype)


if __name__ == "__main__":
    key = jax.random.PRNGKey(0)
    kx, kt, kp = jax.random.split(key, 3)

    # Primary case: batch=16, in_features=32, f32 — exercises the lane-dense
    # packed path ((16*32)/128 = 4 rows of 128 lanes).
    B, F = 16, 32
    x = jax.random.normal(kx, (B, F), dtype=jnp.float32)
    # The module inits transl/proj to zero; use nonzero values to exercise math.
    transl = jax.random.normal(kt, (F,), dtype=jnp.float32)
    proj = jax.random.normal(kp, (F,), dtype=jnp.float32)

    out = transproj_pallas(x, transl, proj)
    jax.block_until_ready(out)
    ref = transproj_ref(x, transl, proj)
    assert out.shape == (B, F), out.shape
    assert jnp.allclose(out, ref, atol=1e-6, rtol=1e-6)

    # Odd batch (9) — exercises the non-packed path + cdiv masked tail.
    x_odd = jax.random.normal(kx, (9, F), dtype=jnp.float32)
    out_odd = transproj_pallas(x_odd, transl, proj)
    jax.block_until_ready(out_odd)
    assert jnp.allclose(out_odd, transproj_ref(x_odd, transl, proj),
                        atol=1e-6, rtol=1e-6)

    # bf16 inputs — add runs in bf16 inside the kernel (looser tolerance vs the
    # f32-accumulated reference).
    x_bf = x.astype(jnp.bfloat16)
    out_bf = transproj_pallas(x_bf, transl, proj)
    jax.block_until_ready(out_bf)
    assert jnp.allclose(out_bf.astype(jnp.float32),
                        transproj_ref(x_bf, transl, proj).astype(jnp.float32),
                        atol=6e-2, rtol=3e-2)

    print("KERNEL_OK")
</pallas_src>

<mosaic_0001>
module attributes {stable_mosaic.version = 11 : i64} {
  func.func @_transproj_kernel(%arg0: i32, %arg1: memref<4x128xf32, #tpu.memory_space<vmem>>, %arg2: memref<1x128xf32, #tpu.memory_space<vmem>>, %arg3: memref<4x128xf32, #tpu.memory_space<vmem>>) attributes {dimension_semantics = [#tpu.dimension_semantics<parallel>], iteration_bounds = array<i64: 1>, scalar_prefetch = 0 : i64, scratch_operands = 0 : i64, tpu.core_type = #tpu.core_type<tc>, window_params = [{transform_indices = @transform_0, window_bounds = array<i64: 4, 128>}, {pipeline_mode = #tpu.pipeline_mode<synchronous>, transform_indices = @transform_1, window_bounds = array<i64: 1, 128>}, {transform_indices = @transform_2, window_bounds = array<i64: 4, 128>}]} {
    %c0 = arith.constant 0 : index
    %c0_0 = arith.constant 0 : index
    %0 = vector.load %arg1[%c0, %c0_0] : memref<4x128xf32, #tpu.memory_space<vmem>>, vector<4x128xf32>
    %c0_1 = arith.constant 0 : index
    %c0_2 = arith.constant 0 : index
    %1 = vector.load %arg2[%c0_1, %c0_2] : memref<1x128xf32, #tpu.memory_space<vmem>>, vector<1x128xf32>
    %2 = vector.broadcast %1 : vector<1x128xf32> to vector<4x128xf32>
    %3 = arith.addf %0, %2 : vector<4x128xf32>
    %c0_3 = arith.constant 0 : index
    %c0_4 = arith.constant 0 : index
    %4 = vector.load %arg3[%c0_3, %c0_4] : memref<4x128xf32, #tpu.memory_space<vmem>>, vector<4x128xf32>
    tpu.vector_store %arg3[%c0_3, %c0_4], %3 {strides = array<i32>} : memref<4x128xf32, #tpu.memory_space<vmem>>, vector<4x128xf32>,
    return
  }
  func.func @transform_0(%arg0: i32) -> (i32, i32) {
    %c0_i32 = arith.constant 0 : i32
    %c0_i32_0 = arith.constant 0 : i32
    return %arg0, %c0_i32 : i32, i32
  }
  func.func @transform_1(%arg0: i32) -> (i32, i32) {
    %c0_i32 = arith.constant 0 : i32
    %c0_i32_0 = arith.constant 0 : i32
    %c0_i32_1 = arith.constant 0 : i32
    return %c0_i32, %c0_i32_0 : i32, i32
  }
  func.func @transform_2(%arg0: i32) -> (i32, i32) {
    %c0_i32 = arith.constant 0 : i32
    %c0_i32_0 = arith.constant 0 : i32
    return %arg0, %c0_i32 : i32, i32
  }
}

</mosaic_0001>

<bundles_post_ra>
// kernel: tpu_custom_call.1
= control target key start
LH: loop header
LB: loop body
LE: loop exit
PB: predicated region body
PF: predicated region fallthrough
CT: control target
= control target key end

     0   :  { %7 = vsyncpa [#allocation3], 0  ;;  %s122_s0 = inlined_call_operand.hbm [shape: f32[4,128], index: 0, kind: input, shape index: {}]   ;;  %s123_s1 = inlined_call_operand.vmem [shape: f32[1,128], index: 1, kind: input, shape index: {}]   ;;  %s124_s2 = inlined_call_operand.hbm [shape: f32[4,128], index: 2, kind: output, shape index: {}]  }
   0x1   :  { %8 = vsyncpa [#allocation4], 0  ;;  %s96_s9 = smov [#allocation2]  }
   0x2   :  { %s15_s10 = sshll.u32 %s96_s9, 4  ;;  %s16_s10 = int_to_ptr.vmem [resolvable:$true] %s15_s10 }
   0x3   :  { %s60_s11 = scalar_lea.vmem %s16_s10, 64  ;;  %p65_p1 = scmp.lt.s32.totalorder %s16_s10, %s16_s10 }
   0x4   :  { %p61_p0 = scmp.ne.s32.totalorder %s16_s10, %s60_s11  ;;  %p66_p2 = scmp.lt.s32.totalorder %s60_s11, %s60_s11 }
   0x6   :  { %p67_p3 = por %p66_p2, %p65_p1 }
   0x8   :  { %p68_p4 = pnand %p67_p3, %p61_p0 }
   0xa   :  { %71 = shalt.err (!%p68_p4)
}
   0xb   :  { %18 = dma.hbm_to_vmem [thread:$0]  %s122_s0, 64, %s16_s10, [#allocation3]  }
   0xc   :  { %92 = dma.done.wait [#allocation3], 64  }
   0xd   :  { %93 = vsyncadd [#allocation3], 4294967232  ;;  %s97_s14 = smov [#allocation5]   ;;  %v24_v0 = vld [vmem:[#allocation2] sm:$0xf] }
   0xe   :  { %s40_s15 = sshll.u32 %s97_s14, 4  ;;  %v49_v1 = vld [vmem:[%s123_s1] ss:$0 sm:$0xff]  ;;  %s41_s15 = int_to_ptr.vmem [resolvable:$true] %s40_s15 }
   0xf   :  { %v32_v2 = vadd.f32 %v49_v1, %v24_v0  ;;  %s72_s18 = scalar_lea.vmem %s41_s15, 64  ;;  %p77_p6 = scmp.lt.s32.totalorder %s41_s15, %s41_s15 }
  0x10   :  { %p73_p5 = scmp.ne.s32.totalorder %s41_s15, %s72_s18  ;;  %p78_p7 = scmp.lt.s32.totalorder %s72_s18, %s72_s18 }
  0x11   :  { %33 = vst [vmem:[#allocation5] sm:$0xf] %v32_v2 }
  0x12   :  { %p79_p8 = por %p78_p7, %p77_p6 }
  0x14   :  { %p80_p9 = pnand %p79_p8, %p73_p5 }
  0x16   :  { %83 = shalt.err (!%p80_p9)
}
  0x17   :  { %43 = dma.vmem_to_hbm [thread:$0]  %s41_s15, 64, %s124_s2, [#allocation4]  }
  0x18   :  { %94 = dma.done.wait [#allocation4], 64  }
  0x19   :  { %95 = vsyncadd [#allocation4], 4294967232 }
  0x1a   :  { %47 = vsyncpa [#allocation3], 1 }
  0x1b   :  { %48 = vsyncpa [#allocation4], 1 }

</bundles_post_ra>
